<compile_context>
chip_gen: v7x
topology: tpu7x:2x2x1
jax: 0.10.0
libtpu: 0.0.40
codegen_flags: <defaults>
</compile_context>

<pallas_src>
import math
import functools

import jax
import jax.numpy as jnp
from jax.experimental import pallas as pl
from jax.experimental.pallas import tpu as pltpu


VMEM_LIMIT_BYTES = 32 * 1024 * 1024   # safe on v5e/v6e/v7x, above v5e's 16 MiB default

# Tile caps.  Worst case (256x512 f32 acc + double-buffered in/out blocks) is a
# few MiB -> comfortably inside the scoped limit on every generation.
TM_CAP = 256   # row tile (sublane axis, align 8)
TN_CAP = 512   # output-column tile (lane axis, align 128)
TK_CAP = 512   # contraction tile (lane axis of x, align 128)


def _pick_tile(dim, cap, align):
    """Largest tile <= cap that divides `dim` and is `align`-aligned, else full extent."""
    if dim <= cap:
        return dim                      # full extent is always a legal block
    t = (cap // align) * align
    while t >= align:
        if dim % t == 0:
            return t
        t -= align
    return dim                          # fall back to full extent


def _compiler_params(semantics):
    return pltpu.CompilerParams(dimension_semantics=semantics,
                                vmem_limit_bytes=VMEM_LIMIT_BYTES)


# ----------------------------------------------------------------------------
# Tiled linear:  out = act(x @ w + b)
# ----------------------------------------------------------------------------

def _linear_kernel(x_ref, w_ref, b_ref, o_ref, acc_ref, *, activation, n_k):
    @pl.when(pl.program_id(2) == 0)
    def _():
        acc_ref[...] = jnp.zeros_like(acc_ref)

    acc_ref[...] += jnp.dot(x_ref[...].astype(jnp.bfloat16),
                            w_ref[...].astype(jnp.bfloat16),
                            preferred_element_type=jnp.float32)

    @pl.when(pl.program_id(2) == n_k - 1)
    def _():
        acc = acc_ref[...] + b_ref[...]
        if activation == "relu":
            acc = jnp.maximum(acc, 0.0)
        o_ref[...] = acc.astype(o_ref.dtype)


def linear(x, w, b, activation=None):
    N, K = x.shape
    M = w.shape[1]
    tm = _pick_tile(N, TM_CAP, 8)
    tn = _pick_tile(M, TN_CAP, 128)
    tk = _pick_tile(K, TK_CAP, 128)
    n_m, n_n, n_k = N // tm, M // tn, K // tk
    return pl.pallas_call(
        functools.partial(_linear_kernel, activation=activation, n_k=n_k),
        out_shape=jax.ShapeDtypeStruct((N, M), x.dtype),
        grid=(n_m, n_n, n_k),
        in_specs=[
            pl.BlockSpec((tm, tk), lambda i, j, k: (i, k)),
            pl.BlockSpec((tk, tn), lambda i, j, k: (k, j)),
            pl.BlockSpec((1, tn), lambda i, j, k: (0, j)),
        ],
        out_specs=pl.BlockSpec((tm, tn), lambda i, j, k: (i, j)),
        scratch_shapes=[pltpu.VMEM((tm, tn), jnp.float32)],
        compiler_params=_compiler_params(("parallel", "parallel", "arbitrary")),
    )(x, w, b.reshape(1, M))


# ----------------------------------------------------------------------------
# Fused linear + residual add + LayerNorm:  y = LN(residual + (x @ w + b))
# (out_proj+norm1 and linear2+norm2 epilogues of each encoder layer)
# ----------------------------------------------------------------------------

def _linear_add_ln_kernel(x_ref, w_ref, b_ref, r_ref, g_ref, be_ref,
                          o_ref, acc_ref, *, eps, n_k):
    @pl.when(pl.program_id(1) == 0)
    def _():
        acc_ref[...] = jnp.zeros_like(acc_ref)

    acc_ref[...] += jnp.dot(x_ref[...].astype(jnp.bfloat16),
                            w_ref[...].astype(jnp.bfloat16),
                            preferred_element_type=jnp.float32)

    @pl.when(pl.program_id(1) == n_k - 1)
    def _():
        y = acc_ref[...] + b_ref[...] + r_ref[...]
        mean = jnp.mean(y, axis=-1, keepdims=True)
        var = jnp.mean((y - mean) ** 2, axis=-1, keepdims=True)
        yn = (y - mean) * jax.lax.rsqrt(var + eps)
        o_ref[...] = (yn * g_ref[...] + be_ref[...]).astype(o_ref.dtype)


def linear_add_layernorm(x, w, b, residual, gamma, beta, eps=1e-5):
    """Output columns span the full model dim E so the LayerNorm reduction
    stays inside one output tile; rows and K are tiled."""
    N, K = x.shape
    E = w.shape[1]
    tm = _pick_tile(N, TM_CAP, 8)
    tk = _pick_tile(K, TK_CAP, 128)
    n_m, n_k = N // tm, K // tk
    return pl.pallas_call(
        functools.partial(_linear_add_ln_kernel, eps=eps, n_k=n_k),
        out_shape=jax.ShapeDtypeStruct((N, E), x.dtype),
        grid=(n_m, n_k),
        in_specs=[
            pl.BlockSpec((tm, tk), lambda i, k: (i, k)),
            pl.BlockSpec((tk, E), lambda i, k: (k, 0)),
            pl.BlockSpec((1, E), lambda i, k: (0, 0)),
            pl.BlockSpec((tm, E), lambda i, k: (i, 0)),
            pl.BlockSpec((1, E), lambda i, k: (0, 0)),
            pl.BlockSpec((1, E), lambda i, k: (0, 0)),
        ],
        out_specs=pl.BlockSpec((tm, E), lambda i, k: (i, 0)),
        scratch_shapes=[pltpu.VMEM((tm, E), jnp.float32)],
        compiler_params=_compiler_params(("parallel", "arbitrary")),
    )(x, w, b.reshape(1, E), residual, gamma.reshape(1, E), beta.reshape(1, E))


# ----------------------------------------------------------------------------
# Multi-head self attention, one batch element per grid step, all heads in VMEM
# ----------------------------------------------------------------------------

def _attention_kernel(qkv_ref, o_ref, *, nhead, dh, scale):
    t = qkv_ref[0]                                  # (S, 3E) f32, packed q|k|v
    E = nhead * dh
    q = (t[:, :E] * scale).astype(jnp.bfloat16)     # scale q (S*Dh) not scores (S*S)
    k = t[:, E:2 * E].astype(jnp.bfloat16)
    v = t[:, 2 * E:3 * E].astype(jnp.bfloat16)
    outs = []
    for h in range(nhead):                          # static unrolled head loop
        sl = slice(h * dh, (h + 1) * dh)
        qh, kh, vh = q[:, sl], k[:, sl], v[:, sl]
        # q @ k^T without an explicit transpose: contract last dims of both.
        s = jax.lax.dot_general(qh, kh, (((1,), (1,)), ((), ())),
                                preferred_element_type=jnp.float32)   # (S, S)
        s = s - jnp.max(s, axis=-1, keepdims=True)
        p = jnp.exp(s)
        p = p * pl.reciprocal(jnp.sum(p, axis=-1, keepdims=True), approx=True)
        outs.append(jnp.dot(p.astype(jnp.bfloat16), vh,
                            preferred_element_type=jnp.float32))      # (S, Dh)
    o_ref[0] = jnp.concatenate(outs, axis=-1).astype(o_ref.dtype)


def attention(qkv, nhead):
    """qkv: (B, S, 3E) packed projections -> (B, S, E) attention output."""
    # TODO(synk): for very long S, tile over S with an online-softmax (flash)
    # loop so the (S, S) score tile stays inside VMEM; moderate S assumed here.
    B, S, E3 = qkv.shape
    E = E3 // 3
    dh = E // nhead
    scale = 1.0 / math.sqrt(dh)
    return pl.pallas_call(
        functools.partial(_attention_kernel, nhead=nhead, dh=dh, scale=scale),
        out_shape=jax.ShapeDtypeStruct((B, S, E), qkv.dtype),
        grid=(B,),
        in_specs=[pl.BlockSpec((1, S, E3), lambda b: (b, 0, 0))],
        out_specs=pl.BlockSpec((1, S, E), lambda b: (b, 0, 0)),
        compiler_params=_compiler_params(("parallel",)),
    )(qkv)


# ----------------------------------------------------------------------------
# STATO parameters & forward
# ----------------------------------------------------------------------------

def init_stato_params(key, embedding_dim, nhead, hidden_dim, nlayers,
                      num_labels, num_detailed_labels_per_level):
    E, Hd = embedding_dim, hidden_dim
    params = {"layers": [], "nhead": nhead}
    scale = 0.02

    def dense(k, fan_in, fan_out):
        kw, kb = jax.random.split(k)
        w = scale * jax.random.normal(kw, (fan_in, fan_out), jnp.float32)
        b = scale * jax.random.normal(kb, (fan_out,), jnp.float32)
        return w, b

    for _ in range(nlayers):
        key, k1, k2, k3, k4 = jax.random.split(key, 5)
        wqkv, bqkv = dense(k1, E, 3 * E)          # in_proj (q,k,v packed)
        wo, bo = dense(k2, E, E)                  # out_proj
        w1, b1 = dense(k3, E, Hd)                 # linear1
        w2, b2 = dense(k4, Hd, E)                 # linear2
        params["layers"].append(dict(
            wqkv=wqkv, bqkv=bqkv, wo=wo, bo=bo,
            w1=w1, b1=b1, w2=w2, b2=b2,
            g1=jnp.ones((E,), jnp.float32), be1=jnp.zeros((E,), jnp.float32),
            g2=jnp.ones((E,), jnp.float32), be2=jnp.zeros((E,), jnp.float32),
        ))

    # Classifier + detailed-label heads, fused into one lane-dense (128-padded)
    # matmul; individual logits are sliced out in the wrapper.
    key, kc = jax.random.split(key)
    wc, bc = dense(kc, E, num_labels)
    head_ws, head_bs, sizes = [wc], [bc], [num_labels]
    for n in num_detailed_labels_per_level:
        key, kd = jax.random.split(key)
        wd, bd = dense(kd, E, n)
        head_ws.append(wd)
        head_bs.append(bd)
        sizes.append(n)
    total = sum(sizes)
    padded = ((total + 127) // 128) * 128
    w_all = jnp.concatenate(head_ws, axis=1)
    b_all = jnp.concatenate(head_bs, axis=0)
    if padded > total:
        w_all = jnp.pad(w_all, ((0, 0), (0, padded - total)))
        b_all = jnp.pad(b_all, (0, padded - total))
    params["w_heads"], params["b_heads"] = w_all, b_all
    params["head_sizes"] = sizes
    params["head_offsets"] = [sum(sizes[:i]) for i in range(len(sizes))]
    return params


def stato_forward(src, params):
    """src: (S, B, E) float32 (PyTorch batch_first=False).  Returns
    (logits (S,B,num_labels), [detailed_logits (S,B,n_i)])."""
    S, B, E = src.shape
    H = params["nhead"]
    # One-time layout change to batch-major tokens (row = b*S + s) so every
    # per-layer kernel slices (batch, seq) blocks with zero further transposes.
    x = src.transpose(1, 0, 2).reshape(B * S, E)

    for lp in params["layers"]:
        # --- self attention: QKV proj -> per-batch MHA -> out_proj + add & norm1
        qkv = linear(x, lp["wqkv"], lp["bqkv"])                    # (B*S, 3E)
        attn = attention(qkv.reshape(B, S, 3 * E), H)              # (B, S, E)
        attn = attn.reshape(B * S, E)
        x = linear_add_layernorm(attn, lp["wo"], lp["bo"], x, lp["g1"], lp["be1"])

        # --- feed forward: linear1 + relu -> linear2 + add & norm2
        ff = linear(x, lp["w1"], lp["b1"], activation="relu")      # (B*S, Hd)
        x = linear_add_layernorm(ff, lp["w2"], lp["b2"], x, lp["g2"], lp["be2"])

    # --- all classifier heads in one lane-dense matmul, sliced afterwards ---
    head_out = linear(x, params["w_heads"], params["b_heads"])     # (B*S, Lpad)
    head_out = head_out.reshape(B, S, -1).transpose(1, 0, 2)       # (S, B, Lpad)
    sizes, offs = params["head_sizes"], params["head_offsets"]
    logits = head_out[..., offs[0]:offs[0] + sizes[0]]
    detailed_logits = [head_out[..., offs[i]:offs[i] + sizes[i]]
                       for i in range(1, len(sizes))]
    return logits, detailed_logits
    # TODO(synk): loss branch (CrossEntropyLoss with ignore_index / detailed-label
    # masking) is training-only glue and not implemented as a Pallas kernel.


# ----------------------------------------------------------------------------
# Demo
# ----------------------------------------------------------------------------

if __name__ == "__main__":
    S, B = 8, 2                     # seq length, batch
    embedding_dim = 32
    nhead = 4
    hidden_dim = 64
    nlayers = 2
    num_labels = 5
    num_detailed_labels_per_level = [3, 4]

    key = jax.random.PRNGKey(0)
    key, ksrc, kparams = jax.random.split(key, 3)
    src = jax.random.normal(ksrc, (S, B, embedding_dim), jnp.float32)

    params = init_stato_params(kparams, embedding_dim, nhead, hidden_dim,
                               nlayers, num_labels, num_detailed_labels_per_level)

    logits, detailed_logits = stato_forward(src, params)
    jax.block_until_ready(logits)
    for dl in detailed_logits:
        jax.block_until_ready(dl)

    assert logits.shape == (S, B, num_labels)
    assert [dl.shape[-1] for dl in detailed_logits] == num_detailed_labels_per_level
    print("KERNEL_OK")
</pallas_src>

<mosaic_0001>
module attributes {stable_mosaic.version = 11 : i64} {
  func.func @_linear_kernel(%arg0: i32, %arg1: i32, %arg2: i32, %arg3: memref<16x32xf32, #tpu.memory_space<vmem>>, %arg4: memref<32x96xf32, #tpu.memory_space<vmem>>, %arg5: memref<1x96xf32, #tpu.memory_space<vmem>>, %arg6: memref<16x96xf32, #tpu.memory_space<vmem>>, %arg7: memref<16x96xf32, #tpu.memory_space<vmem>>) attributes {dimension_semantics = [#tpu.dimension_semantics<parallel>, #tpu.dimension_semantics<parallel>, #tpu.dimension_semantics<arbitrary>], iteration_bounds = array<i64: 1, 1, 1>, scalar_prefetch = 0 : i64, scratch_operands = 1 : i64, tpu.core_type = #tpu.core_type<tc>, window_params = [{transform_indices = @transform_0, window_bounds = array<i64: 16, 32>}, {transform_indices = @transform_1, window_bounds = array<i64: 32, 96>}, {transform_indices = @transform_2, window_bounds = array<i64: 1, 96>}, {transform_indices = @transform_3, window_bounds = array<i64: 16, 96>}]} {
    %c0_i32 = arith.constant 0 : i32
    %0 = arith.cmpi eq, %arg2, %c0_i32 : i32
    %1 = arith.extui %0 : i1 to i32
    %c0_i32_0 = arith.constant 0 : i32
    %2 = arith.cmpi ne, %1, %c0_i32_0 : i32
    scf.if %2 {
      %cst_10 = arith.constant 0.000000e+00 : f32
      %14 = vector.broadcast %cst_10 : f32 to vector<16x96xf32>
      %c0_11 = arith.constant 0 : index
      %c0_12 = arith.constant 0 : index
      %15 = vector.load %arg7[%c0_11, %c0_12] : memref<16x96xf32, #tpu.memory_space<vmem>>, vector<16x96xf32>
      tpu.vector_store %arg7[%c0_11, %c0_12], %14 {strides = array<i32>} : memref<16x96xf32, #tpu.memory_space<vmem>>, vector<16x96xf32>,
    } else {
    }
    %c0 = arith.constant 0 : index
    %c0_1 = arith.constant 0 : index
    %3 = vector.load %arg7[%c0, %c0_1] : memref<16x96xf32, #tpu.memory_space<vmem>>, vector<16x96xf32>
    %c0_2 = arith.constant 0 : index
    %c0_3 = arith.constant 0 : index
    %4 = vector.load %arg3[%c0_2, %c0_3] : memref<16x32xf32, #tpu.memory_space<vmem>>, vector<16x32xf32>
    %5 = arith.truncf %4 : vector<16x32xf32> to vector<16x32xbf16>
    %c0_4 = arith.constant 0 : index
    %c0_5 = arith.constant 0 : index
    %6 = vector.load %arg4[%c0_4, %c0_5] : memref<32x96xf32, #tpu.memory_space<vmem>>, vector<32x96xf32>
    %7 = arith.truncf %6 : vector<32x96xf32> to vector<32x96xbf16>
    %cst = arith.constant dense<0.000000e+00> : vector<16x96xf32>
    %8 = tpu.matmul %5, %7, %cst {dimension_numbers = #tpu.dot_dimension_numbers<[1], [0], [0], [1], [0, 0, 1, 1], [], []>} : vector<16x32xbf16>, vector<32x96xbf16>, vector<16x96xf32> -> vector<16x96xf32>
    %9 = arith.addf %3, %8 : vector<16x96xf32>
    %c0_6 = arith.constant 0 : index
    %c0_7 = arith.constant 0 : index
    %10 = vector.load %arg7[%c0_6, %c0_7] : memref<16x96xf32, #tpu.memory_space<vmem>>, vector<16x96xf32>
    tpu.vector_store %arg7[%c0_6, %c0_7], %9 {strides = array<i32>} : memref<16x96xf32, #tpu.memory_space<vmem>>, vector<16x96xf32>,
    %c0_i32_8 = arith.constant 0 : i32
    %11 = arith.cmpi eq, %arg2, %c0_i32_8 : i32
    %12 = arith.extui %11 : i1 to i32
    %c0_i32_9 = arith.constant 0 : i32
    %13 = arith.cmpi ne, %12, %c0_i32_9 : i32
    scf.if %13 {
      %c0_10 = arith.constant 0 : index
      %c0_11 = arith.constant 0 : index
      %14 = vector.load %arg7[%c0_10, %c0_11] : memref<16x96xf32, #tpu.memory_space<vmem>>, vector<16x96xf32>
      %c0_12 = arith.constant 0 : index
      %c0_13 = arith.constant 0 : index
      %15 = vector.load %arg5[%c0_12, %c0_13] : memref<1x96xf32, #tpu.memory_space<vmem>>, vector<1x96xf32>
      %16 = vector.broadcast %15 : vector<1x96xf32> to vector<16x96xf32>
      %17 = arith.addf %14, %16 : vector<16x96xf32>
      %c0_14 = arith.constant 0 : index
      %c0_15 = arith.constant 0 : index
      %18 = vector.load %arg6[%c0_14, %c0_15] : memref<16x96xf32, #tpu.memory_space<vmem>>, vector<16x96xf32>
      tpu.vector_store %arg6[%c0_14, %c0_15], %17 {strides = array<i32>} : memref<16x96xf32, #tpu.memory_space<vmem>>, vector<16x96xf32>,
    } else {
    }
    return
  }
  func.func @transform_0(%arg0: i32, %arg1: i32, %arg2: i32) -> (i32, i32) {
    %c0_i32 = arith.constant 0 : i32
    return %arg0, %arg2 : i32, i32
  }
  func.func @transform_1(%arg0: i32, %arg1: i32, %arg2: i32) -> (i32, i32) {
    %c0_i32 = arith.constant 0 : i32
    return %arg2, %arg1 : i32, i32
  }
  func.func @transform_2(%arg0: i32, %arg1: i32, %arg2: i32) -> (i32, i32) {
    %c0_i32 = arith.constant 0 : i32
    %c0_i32_0 = arith.constant 0 : i32
    return %c0_i32, %arg1 : i32, i32
  }
  func.func @transform_3(%arg0: i32, %arg1: i32, %arg2: i32) -> (i32, i32) {
    %c0_i32 = arith.constant 0 : i32
    return %arg0, %arg1 : i32, i32
  }
}

</mosaic_0001>

<bundles_post_ra>
// kernel: tpu_custom_call.1
= control target key start
LH: loop header
LB: loop body
LE: loop exit
PB: predicated region body
PF: predicated region fallthrough
CT: control target
= control target key end

     0   :  { %8 = vsyncpa [#allocation4], 0  ;;  %s319_s0 = inlined_call_operand.hbm [shape: f32[16,32], index: 0, kind: input, shape index: {}]   ;;  %s320_s1 = inlined_call_operand.hbm [shape: f32[32,96], index: 1, kind: input, shape index: {}]   ;;  %s321_s2 = inlined_call_operand.vmem [shape: f32[1,96], index: 2, kind: input, shape index: {}]   ;;  %s322_s3 = inlined_call_operand.hbm [shape: f32[16,96], index: 3, kind: output, shape index: {}]  }
   0x1   :  { %9 = vsyncpa [#allocation7], 0 }
   0x2   :  { %10 = vsyncpa [#allocation5], 0  ;;  %s238_s12 = smov [#allocation3]   ;;  %s166_s16 = scalar_lea.hbm %s319_s0, 256 }
   0x3   :  { %s16_s13 = sshll.u32 %s238_s12, 4  ;;  %p167_p0 = scmp.ne.s32.totalorder %s319_s0, %s166_s16  ;;  %s17_s13 = int_to_ptr.vmem [resolvable:$true] %s16_s13 }
   0x4   :  { %p170_p1 = scmp.lt.u32.totalorder %s166_s16, %s319_s0 }
   0x6   :  { %p172_p2 = pnand %p170_p1, %p167_p0 }
   0x8   :  { %175 = shalt.err (!%p172_p2)
}
   0x9   :  { %s176_s21 = scalar_lea.vmem %s17_s13, 256  ;;  %p181_p4 = scmp.lt.s32.totalorder %s17_s13, %s17_s13 }
   0xa   :  { %p177_p3 = scmp.ne.s32.totalorder %s17_s13, %s176_s21  ;;  %p182_p5 = scmp.lt.s32.totalorder %s176_s21, %s176_s21 }
   0xc   :  { %p183_p6 = por %p182_p5, %p181_p4 }
   0xe   :  { %p184_p7 = pnand %p183_p6, %p177_p3 }
  0x10   :  { %187 = shalt.err (!%p184_p7)
}
  0x11   :  { %s239_s22 = smov 128   ;;  %s240_s23 = smov 8  }
  0x12   :  { %22 = dma.hbm_to_vmem [thread:$0]  %s319_s0, 256, %s17_s13, [#allocation4], %s239_s22, %s239_s22, %s240_s23  }
  0x13   :  { %s241_s26 = smov [#allocation6]   ;;  %s188_s30 = scalar_lea.hbm %s320_s1, 512 }
  0x14   :  { %s28_s27 = sshll.u32 %s241_s26, 4  ;;  %p189_p8 = scmp.ne.s32.totalorder %s320_s1, %s188_s30  ;;  %s29_s27 = int_to_ptr.vmem [resolvable:$true] %s28_s27 }
  0x15   :  { %p192_p9 = scmp.lt.u32.totalorder %s188_s30, %s320_s1 }
  0x17   :  { %p194_p10 = pnand %p192_p9, %p189_p8 }
  0x19   :  { %197 = shalt.err (!%p194_p10)
}
  0x1a   :  { %s198_s8 = scalar_lea.vmem %s29_s27, 512  ;;  %p203_p12 = scmp.lt.s32.totalorder %s29_s27, %s29_s27 }
  0x1b   :  { %p199_p11 = scmp.ne.s32.totalorder %s29_s27, %s198_s8  ;;  %p204_p13 = scmp.lt.s32.totalorder %s198_s8, %s198_s8 }
  0x1d   :  { %p205_p0 = por %p204_p13, %p203_p12 }
  0x1f   :  { %p206_p1 = pnand %p205_p0, %p199_p11 }
  0x21   :  { %209 = shalt.err (!%p206_p1)
}
  0x22   :  { %34 = dma.hbm_to_vmem [thread:$0]  %s320_s1, 512, %s29_s27, [#allocation7], %s239_s22, %s239_s22, %s240_s23  }
  0x23   :  { %232 = dma.done.wait [#allocation4], 256  }
  0x24   :  { %233 = vsyncadd [#allocation4], 4294967040 }
  0x25   :  { %234 = dma.done.wait [#allocation7], 512  }
  0x26   :  { %235 = vsyncadd [#allocation7], 4294966784  ;;  %vm48_vm0 = vcmask 785408   ;;  %v242_v0 = vmov 0.0   ;;  %vm243_vm1 = vmmov 0   ;;  %v56_v1 = vld [vmem:[#allocation6] sm:$0xff] }
  0x27   :  { %49 = vst.msk [vmem:[#allocation2] sm:$0xff] %vm48_vm0, %v242_v0  ;;  %50 = vst.msk [vmem:[#allocation2 + $0x8] sm:$0xff] %vm48_vm0, %v242_v0  ;;  %151 = vmatprep.subr.bf16.mxu0 %v242_v0  ;;  %155 = vmatprep.mubr.msk.bf16.mxu0 %vm243_vm1, %v242_v0  ;;  %v57_v2 = vld [vmem:[#allocation6 + $0x8] sm:$0xff]  ;;  %v58_v3 = vld [vmem:[#allocation6 + $0x10] sm:$0xff]  ;;  %vm62_vm2 = vcmask 261120   ;;  %s244_s11 = smov [#allocation8]  }
  0x28   :  { %v60_v4 = vpack.c.bf16 %v57_v2, %v56_v1  ;;  %v59_v5 = vld [vmem:[#allocation6 + $0x18] sm:$0xff]  ;;  %v53_v7 = vld [vmem:[#allocation3] sm:$0xff]  ;;  %v147_v18 = vld [vmem:[%s321_s2] ss:$0 sm:$0xff]  ;;  %s133_s12 = sshll.u32 %s244_s11, 4  ;;  %s134_s12 = int_to_ptr.vmem [resolvable:$true] %s133_s12 }
  0x29   :  { %v61_v6 = vpack.c.bf16 %v59_v5, %v58_v3  ;;  %v54_v8 = vld [vmem:[#allocation3 + $0x8] sm:$0xff]  ;;  %s210_s13 = scalar_lea.vmem %s134_s12, 256  ;;  %p215_p3 = scmp.lt.s32.totalorder %s134_s12, %s134_s12 }
  0x2a   :  { %152 = vmatpush3.bf16.msra.mxu0 %v60_v4  ;;  %v55_v9 = vpack.c.bf16 %v54_v8, %v53_v7  ;;  %p211_p2 = scmp.ne.s32.totalorder %s134_s12, %s210_s13  ;;  %p216_p4 = scmp.lt.s32.totalorder %s210_s13, %s210_s13 }
  0x2b   :  { %153 = vmatprep.subr.bf16.mxu0 %v242_v0 }
  0x2c   :  { %p217_p5 = por %p216_p4, %p215_p3 }
  0x2e   :  { %154 = vmatpush3.bf16.msra.mxu0 %v61_v6  ;;  %v51_v10 = vld [vmem:[#allocation2] sm:$0xff]  ;;  %v52_v12 = vld [vmem:[#allocation2 + $0x8] sm:$0xff]  ;;  %p218_p6 = pnand %p217_p5, %p211_p2 }
  0x31   :  { %156 = vmatmul.mubr.msk.bf16.vlgmr.msra.gmra.mrb[0].mxu0 %vm62_vm2, %v55_v9 }
 0x104   :  { %v100_v11 = vpop.f32.mrb[0].mxu0 }
 0x105   :  { %v107_v13 = vadd.f32 %v100_v11, %v51_v10  ;;  %v157_v14 = vpop.f32.mrb[1].mxu0 }
 0x106   :  { %v103_v15 = vpop.f32.mrb[2].mxu0 }
 0x107   :  { %110 = vst.msk [vmem:[#allocation2] sm:$0xff] %vm48_vm0, %v107_v13  ;;  %v108_v16 = vadd.f32 %v103_v15, %v52_v12  ;;  %v158_v17 = vpop.f32.mrb[3].mxu0 }
 0x109   :  { %111 = vst.msk [vmem:[#allocation2 + $0x8] sm:$0xff] %vm48_vm0, %v108_v16 }
 0x10e   :  { %v115_v19 = vld [vmem:[#allocation2] sm:$0xff] }
 0x10f   :  { %v124_v20 = vadd.f32 %v147_v18, %v115_v19 }
 0x110   :  { %v116_v21 = vld [vmem:[#allocation2 + $0x8] sm:$0xff] }
 0x111   :  { %v125_v22 = vadd.f32 %v147_v18, %v116_v21  ;;  %126 = vst.msk [vmem:[#allocation8] sm:$0xff] %vm48_vm0, %v124_v20 }
 0x113   :  { %127 = vst.msk [vmem:[#allocation8 + $0x8] sm:$0xff] %vm48_vm0, %v125_v22 }
 0x114   :  { %221 = shalt.err (!%p218_p6)
}
 0x115   :  { %s222_s15 = scalar_lea.hbm %s322_s3, 256 }
 0x116   :  { %p223_p7 = scmp.ne.s32.totalorder %s322_s3, %s222_s15  ;;  %p226_p8 = scmp.lt.u32.totalorder %s222_s15, %s322_s3 }
 0x118   :  { %p228_p9 = pnand %p226_p8, %p223_p7 }
 0x11a   :  { %231 = shalt.err (!%p228_p9)
}
 0x11b   :  { %139 = dma.vmem_to_hbm [thread:$0]  %s134_s12, 256, %s322_s3, [#allocation5], %s239_s22, %s239_s22, %s240_s23  }
 0x11c   :  { %236 = dma.done.wait [#allocation5], 256  }
 0x11d   :  { %237 = vsyncadd [#allocation5], 4294967040 }
 0x11e   :  { %143 = vsyncpa [#allocation4], 1 }
 0x11f   :  { %144 = vsyncpa [#allocation7], 1 }
 0x120   :  { %145 = vsyncpa [#allocation5], 1 }

</bundles_post_ra>
